<compile_context>
chip_gen: v7x
topology: tpu7x:2x2x1
jax: 0.10.0
libtpu: 0.0.40
codegen_flags: <defaults>
</compile_context>

<pallas_src>
import math

import jax
import jax.numpy as jnp
from jax import lax
from jax.experimental import pallas as pl
from jax.experimental.pallas import tpu as pltpu

_INV_SQRT2 = 1.0 / math.sqrt(2.0)


def _round_up(x, m):
    return (x + m - 1) // m * m


def _vmem_capacity_bytes():
    try:
        cap = int(pltpu.get_tpu_info().vmem_capacity_bytes)
        if cap > 0:
            return cap
    except Exception:
        pass
    return 64 << 20  # conservative fallback == v7x per-core VMEM


def _working_bytes(tm, tk, H, itemsize, out_itemsize):
    """Rough per-step VMEM working set (double-buffered pipelined operands)."""
    return (
        2 * tm * H * itemsize        # x row tile
        + 2 * H * tk * itemsize      # W1 column tile
        + 2 * tk * H * itemsize      # W2 row tile
        + 2 * tk * 4 + 8 * H * 4     # biases / LayerNorm params
        + 2 * tm * H * out_itemsize  # output tile
        + tm * H * 4                 # f32 accumulator scratch
        + tm * tk * 4                # f32 GELU intermediate (vreg/VMEM temps)
    )


def _make_ffn_kernel(eps, approx_gelu):
    def kernel(x_ref, w1_ref, b1_ref, w2_ref, b2_ref, g_ref, bt_ref, o_ref, acc_ref):
        k = pl.program_id(1)

        @pl.when(k == 0)
        def _init():
            acc_ref[...] = jnp.zeros_like(acc_ref)

        x = x_ref[...]
        # First matmul (H contraction), f32 accumulation on the MXU.
        h = jnp.dot(x, w1_ref[...], preferred_element_type=jnp.float32)
        h = h + b1_ref[...].astype(jnp.float32)
        if approx_gelu:
            # tanh-approx GELU: tanh goes to the EUP (separate VLIW slot).
            c = 0.7978845608028654  # sqrt(2/pi)
            h = 0.5 * h * (1.0 + jnp.tanh(c * (h + 0.044715 * h * h * h)))
        else:
            # Exact erf GELU == transformers ACT2FN["gelu"].
            h = 0.5 * h * (1.0 + lax.erf(h * _INV_SQRT2))
        # Second matmul (I contraction tile), accumulated in f32 scratch.
        acc_ref[...] += jnp.dot(h.astype(w2_ref.dtype), w2_ref[...],
                                preferred_element_type=jnp.float32)

        @pl.when(k == pl.num_programs(1) - 1)
        def _finalize():
            y = acc_ref[...] + b2_ref[...].astype(jnp.float32) + x.astype(jnp.float32)
            mu = jnp.mean(y, axis=-1, keepdims=True)
            yc = y - mu
            var = jnp.mean(yc * yc, axis=-1, keepdims=True)
            inv = lax.rsqrt(var + eps)
            o_ref[...] = (yc * inv * g_ref[...].astype(jnp.float32)
                          + bt_ref[...].astype(jnp.float32)).astype(o_ref.dtype)

    return kernel


def layout_roberta_ffn(hidden_states, w1_t, b1, w2_t, b2, ln_gamma, ln_beta, *,
                       eps=1e-5, compute_dtype=jnp.bfloat16, approx_gelu=False,
                       tm=None, tk=None):
    """Fused FFN: LayerNorm(GELU(x @ W1 + b1) @ W2 + b2 + x).

    hidden_states: (B, S, H). w1_t: (H, I) = intermediate.dense.weight.T,
    w2_t: (I, H) = output.dense.weight.T. Returns (B, S, H) in the input dtype.
    """
    B, S, H = hidden_states.shape
    Hw, I = w1_t.shape
    assert Hw == H, "w1_t must be (hidden_size, intermediate_size)"
    assert w2_t.shape == (I, H), "w2_t must be (intermediate_size, hidden_size)"

    M = B * S
    out_dtype = hidden_states.dtype
    itemsize = jnp.dtype(compute_dtype).itemsize
    out_itemsize = jnp.dtype(out_dtype).itemsize

    x2d = hidden_states.reshape(M, H)
    if x2d.dtype != compute_dtype:
        x2d = x2d.astype(compute_dtype)
    # Weights: cast only if needed (pre-cast them at model init in production).
    w1 = w1_t if w1_t.dtype == compute_dtype else w1_t.astype(compute_dtype)
    w2 = w2_t if w2_t.dtype == compute_dtype else w2_t.astype(compute_dtype)
    b1_2d = b1.reshape(1, I).astype(jnp.float32)
    b2_2d = b2.reshape(1, H).astype(jnp.float32)
    g_2d = ln_gamma.reshape(1, H).astype(jnp.float32)
    bt_2d = ln_beta.reshape(1, H).astype(jnp.float32)

    usable = int(_vmem_capacity_bytes() * 0.85)  # leave compiler headroom

    tm_cands = [max(8, int(tm))] if tm is not None else [256, 192, 128, 64, 32, 16, 8]
    if tk is not None:
        tk_cands = [min(int(tk), I)]
    else:
        tk_cands = [I] + [t for t in (2048, 1024, 512, 256, 128) if t < I]

    sel = None
    for tk_try in tk_cands:            # prefer the weight-resident path (tk == I)
        for tm_try in tm_cands:        # then the largest row tile that fits
            tm_eff = M if M <= tm_try else tm_try
            wb = _working_bytes(tm_eff, tk_try, H, itemsize, out_itemsize)
            if wb * 1.15 <= usable:
                sel = (tm_eff, tk_try, wb)
                break
        if sel is not None:
            break
    if sel is None:  # best effort with the smallest candidates
        tm_eff = M if M <= tm_cands[-1] else tm_cands[-1]
        tk_try = tk_cands[-1]
        sel = (tm_eff, tk_try, _working_bytes(tm_eff, tk_try, H, itemsize, out_itemsize))
    tm_eff, tk_eff, working = sel

    # Zero-pad the (weight-only) reduction dim when it is streamed in tiles;
    # GELU(0)=0 and zero W2 rows keep padded contributions exactly zero.
    if I % tk_eff != 0:
        I_pad = _round_up(I, tk_eff)
        w1 = jnp.pad(w1, ((0, 0), (0, I_pad - I)))
        b1_2d = jnp.pad(b1_2d, ((0, 0), (0, I_pad - I)))
        w2 = jnp.pad(w2, ((0, I_pad - I), (0, 0)))
    else:
        I_pad = I
    k_tiles = I_pad // tk_eff

    vmem_limit = int(min(max(int(working * 1.3), 32 << 20), usable))

    grid = (pl.cdiv(M, tm_eff), k_tiles)
    kernel = _make_ffn_kernel(float(eps), bool(approx_gelu))

    cost = pl.CostEstimate(
        flops=4 * M * H * I_pad,                 # two matmuls
        transcendentals=M * I_pad,               # erf / tanh
        bytes_accessed=(M * H * itemsize         # x
                        + 2 * H * I_pad * itemsize   # W1 + W2
                        + (I_pad + 3 * H) * 4        # biases / LN params
                        + M * H * out_itemsize),     # out
    )

    out2d = pl.pallas_call(
        kernel,
        out_shape=jax.ShapeDtypeStruct((M, H), out_dtype),
        grid_spec=pltpu.PrefetchScalarGridSpec(
            num_scalar_prefetch=0,
            grid=grid,
            in_specs=[
                pl.BlockSpec((tm_eff, H), lambda i, k: (i, 0)),   # x row tile (re-used over k)
                pl.BlockSpec((H, tk_eff), lambda i, k: (0, k)),   # W1 column tile
                pl.BlockSpec((1, tk_eff), lambda i, k: (0, k)),   # b1 tile
                pl.BlockSpec((tk_eff, H), lambda i, k: (k, 0)),   # W2 row tile
                pl.BlockSpec((1, H), lambda i, k: (0, 0)),        # b2 (resident)
                pl.BlockSpec((1, H), lambda i, k: (0, 0)),        # LN gamma (resident)
                pl.BlockSpec((1, H), lambda i, k: (0, 0)),        # LN beta (resident)
            ],
            out_specs=pl.BlockSpec((tm_eff, H), lambda i, k: (i, 0)),
            scratch_shapes=[pltpu.VMEM((tm_eff, H), jnp.float32)],
        ),
        compiler_params=pltpu.CompilerParams(
            dimension_semantics=("parallel", "arbitrary"),
            vmem_limit_bytes=vmem_limit,
        ),
        cost_estimate=cost,
    )(x2d, w1, b1_2d, w2, b2_2d, g_2d, bt_2d)

    return out2d.reshape(B, S, H)


if __name__ == "__main__":
    # Small config consistent with the module: hidden_size=32, intermediate_size=128
    B, S, H, I = 2, 8, 32, 128
    eps = 1e-5

    key = jax.random.PRNGKey(0)
    ks = jax.random.split(key, 9)
    x = jax.random.normal(ks[0], (B, S, H), jnp.float32)
    # PyTorch nn.Linear weights are (out, in); we keep the transposes.
    w1_t = jax.random.normal(ks[1], (H, I), jnp.float32) * 0.05
    b1 = jax.random.normal(ks[2], (I,), jnp.float32) * 0.05
    w2_t = jax.random.normal(ks[3], (I, H), jnp.float32) * 0.05
    b2 = jax.random.normal(ks[4], (H,), jnp.float32) * 0.05
    gamma = 1.0 + 0.05 * jax.random.normal(ks[5], (H,), jnp.float32)
    beta = 0.05 * jax.random.normal(ks[6], (H,), jnp.float32)

    def reference(xq, w1, b1_, w2, b2_, g, bt):
        x2 = xq.reshape(-1, xq.shape[-1]).astype(jnp.float32)
        h = jnp.dot(x2, w1, precision=lax.Precision.HIGHEST) + b1_
        h = 0.5 * h * (1.0 + lax.erf(h * _INV_SQRT2))
        y = jnp.dot(h, w2, precision=lax.Precision.HIGHEST) + b2_ + x2
        mu = y.mean(-1, keepdims=True)
        var = ((y - mu) ** 2).mean(-1, keepdims=True)
        out = (y - mu) / jnp.sqrt(var + eps) * g + bt
        return out.reshape(xq.shape)

    ref = reference(x, w1_t, b1, w2_t, b2, gamma, beta)

    # 1) f32 compute path (exact erf GELU), weight-resident tiling.
    o32 = jax.block_until_ready(
        layout_roberta_ffn(x, w1_t, b1, w2_t, b2, gamma, beta,
                           eps=eps, compute_dtype=jnp.float32))
    assert o32.shape == (B, S, H)
    assert jnp.allclose(o32, ref, atol=2e-3, rtol=2e-3)

    # 2) Default bf16 MXU path with f32 accumulation; weights pre-cast once
    #    (avoids a per-call HBM cast of the weights).
    w1_bf, w2_bf = w1_t.astype(jnp.bfloat16), w2_t.astype(jnp.bfloat16)
    obf = jax.block_until_ready(
        layout_roberta_ffn(x, w1_bf, b1, w2_bf, b2, gamma, beta, eps=eps))
    assert obf.dtype == x.dtype
    assert jnp.allclose(obf, ref, atol=8e-2, rtol=8e-2)

    # 3) Streamed I-reduction (tk < I), ragged row count (partial edge block).
    I2 = 256
    w1b = jax.random.normal(ks[7], (H, I2), jnp.float32) * 0.05
    b1b = jax.random.normal(ks[8], (I2,), jnp.float32) * 0.05
    w2b = jax.random.normal(ks[1], (I2, H), jnp.float32) * 0.05
    x_r = x[:, :7, :]
    ref_r = reference(x_r, w1b, b1b, w2b, b2, gamma, beta)
    o_s = jax.block_until_ready(
        layout_roberta_ffn(x_r, w1b, b1b, w2b, b2, gamma, beta,
                           eps=eps, compute_dtype=jnp.float32, tm=8, tk=128))
    assert o_s.shape == (B, 7, H)
    assert jnp.allclose(o_s, ref_r, atol=2e-3, rtol=2e-3)

    # 4) Optional tanh-approx GELU (EUP) path — looser tolerance vs exact erf.
    o_tanh = jax.block_until_ready(
        layout_roberta_ffn(x, w1_t, b1, w2_t, b2, gamma, beta,
                           eps=eps, compute_dtype=jnp.float32, approx_gelu=True))
    assert jnp.allclose(o_tanh, ref, atol=2e-2, rtol=2e-2)

    print("KERNEL_OK")
</pallas_src>

<mosaic_0001>
module attributes {stable_mosaic.version = 11 : i64} {
  func.func @kernel(%arg0: i32, %arg1: i32, %arg2: memref<16x32xf32, #tpu.memory_space<vmem>>, %arg3: memref<32x128xf32, #tpu.memory_space<vmem>>, %arg4: memref<1x128xf32, #tpu.memory_space<vmem>>, %arg5: memref<128x32xf32, #tpu.memory_space<vmem>>, %arg6: memref<1x32xf32, #tpu.memory_space<vmem>>, %arg7: memref<1x32xf32, #tpu.memory_space<vmem>>, %arg8: memref<1x32xf32, #tpu.memory_space<vmem>>, %arg9: memref<16x32xf32, #tpu.memory_space<vmem>>, %arg10: memref<16x32xf32, #tpu.memory_space<vmem>>) attributes {dimension_semantics = [#tpu.dimension_semantics<parallel>, #tpu.dimension_semantics<arbitrary>], iteration_bounds = array<i64: 1, 1>, scalar_prefetch = 0 : i64, scratch_operands = 1 : i64, tpu.core_type = #tpu.core_type<tc>, window_params = [{transform_indices = @transform_0, window_bounds = array<i64: 16, 32>}, {transform_indices = @transform_1, window_bounds = array<i64: 32, 128>}, {transform_indices = @transform_2, window_bounds = array<i64: 1, 128>}, {transform_indices = @transform_3, window_bounds = array<i64: 128, 32>}, {pipeline_mode = #tpu.pipeline_mode<synchronous>, transform_indices = @transform_4, window_bounds = array<i64: 1, 32>}, {pipeline_mode = #tpu.pipeline_mode<synchronous>, transform_indices = @transform_5, window_bounds = array<i64: 1, 32>}, {pipeline_mode = #tpu.pipeline_mode<synchronous>, transform_indices = @transform_6, window_bounds = array<i64: 1, 32>}, {transform_indices = @transform_7, window_bounds = array<i64: 16, 32>}]} {
    %c0_i32 = arith.constant 0 : i32
    %0 = arith.cmpi eq, %arg1, %c0_i32 : i32
    %1 = arith.extui %0 : i1 to i32
    %c0_i32_0 = arith.constant 0 : i32
    %2 = arith.cmpi ne, %1, %c0_i32_0 : i32
    scf.if %2 {
      %cst_18 = arith.constant 0.000000e+00 : f32
      %25 = vector.broadcast %cst_18 : f32 to vector<16x32xf32>
      %c0_19 = arith.constant 0 : index
      %c0_20 = arith.constant 0 : index
      %26 = vector.load %arg10[%c0_19, %c0_20] : memref<16x32xf32, #tpu.memory_space<vmem>>, vector<16x32xf32>
      tpu.vector_store %arg10[%c0_19, %c0_20], %25 {strides = array<i32>} : memref<16x32xf32, #tpu.memory_space<vmem>>, vector<16x32xf32>,
    } else {
    }
    %c0 = arith.constant 0 : index
    %c0_1 = arith.constant 0 : index
    %3 = vector.load %arg2[%c0, %c0_1] : memref<16x32xf32, #tpu.memory_space<vmem>>, vector<16x32xf32>
    %c0_2 = arith.constant 0 : index
    %c0_3 = arith.constant 0 : index
    %4 = vector.load %arg3[%c0_2, %c0_3] : memref<32x128xf32, #tpu.memory_space<vmem>>, vector<32x128xf32>
    %cst = arith.constant dense<0.000000e+00> : vector<16x128xf32>
    %5 = tpu.matmul %3, %4, %cst {dimension_numbers = #tpu.dot_dimension_numbers<[1], [0], [0], [1], [0, 0, 1, 1], [], []>} : vector<16x32xf32>, vector<32x128xf32>, vector<16x128xf32> -> vector<16x128xf32>
    %c0_4 = arith.constant 0 : index
    %c0_5 = arith.constant 0 : index
    %6 = vector.load %arg4[%c0_4, %c0_5] : memref<1x128xf32, #tpu.memory_space<vmem>>, vector<1x128xf32>
    %7 = vector.broadcast %6 : vector<1x128xf32> to vector<16x128xf32>
    %8 = arith.addf %5, %7 : vector<16x128xf32>
    %cst_6 = arith.constant 5.000000e-01 : f32
    %9 = vector.broadcast %cst_6 : f32 to vector<16x128xf32>
    %10 = arith.mulf %9, %8 : vector<16x128xf32>
    %cst_7 = arith.constant 0.707106769 : f32
    %11 = vector.broadcast %cst_7 : f32 to vector<16x128xf32>
    %12 = arith.mulf %8, %11 : vector<16x128xf32>
    %13 = math.erf %12 : vector<16x128xf32>
    %cst_8 = arith.constant 1.000000e+00 : f32
    %14 = vector.broadcast %cst_8 : f32 to vector<16x128xf32>
    %15 = arith.addf %14, %13 : vector<16x128xf32>
    %16 = arith.mulf %10, %15 : vector<16x128xf32>
    %c0_9 = arith.constant 0 : index
    %c0_10 = arith.constant 0 : index
    %17 = vector.load %arg10[%c0_9, %c0_10] : memref<16x32xf32, #tpu.memory_space<vmem>>, vector<16x32xf32>
    %c0_11 = arith.constant 0 : index
    %c0_12 = arith.constant 0 : index
    %18 = vector.load %arg5[%c0_11, %c0_12] : memref<128x32xf32, #tpu.memory_space<vmem>>, vector<128x32xf32>
    %cst_13 = arith.constant dense<0.000000e+00> : vector<16x32xf32>
    %19 = tpu.matmul %16, %18, %cst_13 {dimension_numbers = #tpu.dot_dimension_numbers<[1], [0], [0], [1], [0, 0, 1, 1], [], []>} : vector<16x128xf32>, vector<128x32xf32>, vector<16x32xf32> -> vector<16x32xf32>
    %20 = arith.addf %17, %19 : vector<16x32xf32>
    %c0_14 = arith.constant 0 : index
    %c0_15 = arith.constant 0 : index
    %21 = vector.load %arg10[%c0_14, %c0_15] : memref<16x32xf32, #tpu.memory_space<vmem>>, vector<16x32xf32>
    tpu.vector_store %arg10[%c0_14, %c0_15], %20 {strides = array<i32>} : memref<16x32xf32, #tpu.memory_space<vmem>>, vector<16x32xf32>,
    %c0_i32_16 = arith.constant 0 : i32
    %22 = arith.cmpi eq, %arg1, %c0_i32_16 : i32
    %23 = arith.extui %22 : i1 to i32
    %c0_i32_17 = arith.constant 0 : i32
    %24 = arith.cmpi ne, %23, %c0_i32_17 : i32
    scf.if %24 {
      %c0_18 = arith.constant 0 : index
      %c0_19 = arith.constant 0 : index
      %25 = vector.load %arg10[%c0_18, %c0_19] : memref<16x32xf32, #tpu.memory_space<vmem>>, vector<16x32xf32>
      %c0_20 = arith.constant 0 : index
      %c0_21 = arith.constant 0 : index
      %26 = vector.load %arg6[%c0_20, %c0_21] : memref<1x32xf32, #tpu.memory_space<vmem>>, vector<1x32xf32>
      %27 = vector.broadcast %26 : vector<1x32xf32> to vector<16x32xf32>
      %28 = arith.addf %25, %27 : vector<16x32xf32>
      %29 = arith.addf %28, %3 : vector<16x32xf32>
      %cst_22 = arith.constant dense<0.000000e+00> : vector<16xf32>
      %30 = vector.multi_reduction <add>, %29, %cst_22 [1] : vector<16x32xf32> to vector<16xf32>
      %31 = vector.shape_cast %30 : vector<16xf32> to vector<16x1xf32>
      %cst_23 = arith.constant 3.200000e+01 : f32
      %32 = vector.broadcast %cst_23 : f32 to vector<16x1xf32>
      %33 = arith.divf %31, %32 : vector<16x1xf32>
      %34 = vector.broadcast %33 : vector<16x1xf32> to vector<16x32xf32>
      %35 = arith.subf %29, %34 : vector<16x32xf32>
      %36 = arith.mulf %35, %35 : vector<16x32xf32>
      %cst_24 = arith.constant dense<0.000000e+00> : vector<16xf32>
      %37 = vector.multi_reduction <add>, %36, %cst_24 [1] : vector<16x32xf32> to vector<16xf32>
      %38 = vector.shape_cast %37 : vector<16xf32> to vector<16x1xf32>
      %cst_25 = arith.constant 3.200000e+01 : f32
      %39 = vector.broadcast %cst_25 : f32 to vector<16x1xf32>
      %40 = arith.divf %38, %39 : vector<16x1xf32>
      %cst_26 = arith.constant 9.99999974E-6 : f32
      %41 = vector.broadcast %cst_26 : f32 to vector<16x1xf32>
      %42 = arith.addf %40, %41 : vector<16x1xf32>
      %43 = math.rsqrt %42 : vector<16x1xf32>
      %44 = vector.broadcast %43 : vector<16x1xf32> to vector<16x32xf32>
      %45 = arith.mulf %35, %44 : vector<16x32xf32>
      %c0_27 = arith.constant 0 : index
      %c0_28 = arith.constant 0 : index
      %46 = vector.load %arg7[%c0_27, %c0_28] : memref<1x32xf32, #tpu.memory_space<vmem>>, vector<1x32xf32>
      %47 = vector.broadcast %46 : vector<1x32xf32> to vector<16x32xf32>
      %48 = arith.mulf %45, %47 : vector<16x32xf32>
      %c0_29 = arith.constant 0 : index
      %c0_30 = arith.constant 0 : index
      %49 = vector.load %arg8[%c0_29, %c0_30] : memref<1x32xf32, #tpu.memory_space<vmem>>, vector<1x32xf32>
      %50 = vector.broadcast %49 : vector<1x32xf32> to vector<16x32xf32>
      %51 = arith.addf %48, %50 : vector<16x32xf32>
      %c0_31 = arith.constant 0 : index
      %c0_32 = arith.constant 0 : index
      %52 = vector.load %arg9[%c0_31, %c0_32] : memref<16x32xf32, #tpu.memory_space<vmem>>, vector<16x32xf32>
      tpu.vector_store %arg9[%c0_31, %c0_32], %51 {strides = array<i32>} : memref<16x32xf32, #tpu.memory_space<vmem>>, vector<16x32xf32>,
    } else {
    }
    return
  }
  func.func @transform_0(%arg0: i32, %arg1: i32) -> (i32, i32) {
    %c0_i32 = arith.constant 0 : i32
    %c0_i32_0 = arith.constant 0 : i32
    return %arg0, %c0_i32 : i32, i32
  }
  func.func @transform_1(%arg0: i32, %arg1: i32) -> (i32, i32) {
    %c0_i32 = arith.constant 0 : i32
    %c0_i32_0 = arith.constant 0 : i32
    return %c0_i32, %arg1 : i32, i32
  }
  func.func @transform_2(%arg0: i32, %arg1: i32) -> (i32, i32) {
    %c0_i32 = arith.constant 0 : i32
    %c0_i32_0 = arith.constant 0 : i32
    return %c0_i32, %arg1 : i32, i32
  }
  func.func @transform_3(%arg0: i32, %arg1: i32) -> (i32, i32) {
    %c0_i32 = arith.constant 0 : i32
    %c0_i32_0 = arith.constant 0 : i32
    return %arg1, %c0_i32 : i32, i32
  }
  func.func @transform_4(%arg0: i32, %arg1: i32) -> (i32, i32) {
    %c0_i32 = arith.constant 0 : i32
    %c0_i32_0 = arith.constant 0 : i32
    %c0_i32_1 = arith.constant 0 : i32
    return %c0_i32, %c0_i32_0 : i32, i32
  }
  func.func @transform_5(%arg0: i32, %arg1: i32) -> (i32, i32) {
    %c0_i32 = arith.constant 0 : i32
    %c0_i32_0 = arith.constant 0 : i32
    %c0_i32_1 = arith.constant 0 : i32
    return %c0_i32, %c0_i32_0 : i32, i32
  }
  func.func @transform_6(%arg0: i32, %arg1: i32) -> (i32, i32) {
    %c0_i32 = arith.constant 0 : i32
    %c0_i32_0 = arith.constant 0 : i32
    %c0_i32_1 = arith.constant 0 : i32
    return %c0_i32, %c0_i32_0 : i32, i32
  }
  func.func @transform_7(%arg0: i32, %arg1: i32) -> (i32, i32) {
    %c0_i32 = arith.constant 0 : i32
    %c0_i32_0 = arith.constant 0 : i32
    return %arg0, %c0_i32 : i32, i32
  }
}

</mosaic_0001>

<bundles_post_ra>
// kernel: tpu_custom_call.1
= control target key start
LH: loop header
LB: loop body
LE: loop exit
PB: predicated region body
PF: predicated region fallthrough
CT: control target
= control target key end

     0   :  { %vm31_vm0 = vcmask 261120   ;;  %s621_s0 = inlined_call_operand.vmem [shape: f32[16,32], index: 0, kind: input, shape index: {}]   ;;  %s622_s1 = inlined_call_operand.vmem [shape: f32[32,128], index: 1, kind: input, shape index: {}]   ;;  %s623_s2 = inlined_call_operand.vmem [shape: f32[1,128], index: 2, kind: input, shape index: {}]   ;;  %s624_s3 = inlined_call_operand.vmem [shape: f32[128,32], index: 3, kind: input, shape index: {}]   ;;  %s625_s4 = inlined_call_operand.vmem [shape: f32[1,32], index: 4, kind: input, shape index: {}]   ;;  %s626_s5 = inlined_call_operand.vmem [shape: f32[1,32], index: 5, kind: input, shape index: {}]   ;;  %s627_s6 = inlined_call_operand.vmem [shape: f32[1,32], index: 6, kind: input, shape index: {}]   ;;  %s628_s7 = inlined_call_operand.hbm [shape: f32[16,32], index: 7, kind: output, shape index: {}]  }
   0x1   :  { %v36_v0 = vld [vmem:[%s622_s1] sm:$0xff]  ;;  %v37_v1 = vld [vmem:[%s622_s1 + $0x8] sm:$0xff]  ;;  %v38_v2 = vld [vmem:[%s622_s1 + $0x10] sm:$0xff] }
   0x2   :  { %v391_v3 = vpack.c.bf16 %v37_v1, %v36_v0  ;;  %v39_v4 = vld [vmem:[%s622_s1 + $0x18] sm:$0xff]  ;;  %v526_v5 = vld [vmem:[%s621_s0] sm:$0xff]  ;;  %v142_v8 = vld [vmem:[%s624_s3 + $0x8] sm:$0xff] }
   0x3   :  { %v395_v6 = vpack.c.bf16 %v39_v4, %v38_v2  ;;  %353 = vmatprep.mubr.msk.f32.mxu0 %vm31_vm0, %v526_v5  ;;  %v141_v7 = vld [vmem:[%s624_s3] sm:$0xff]  ;;  %v143_v9 = vld [vmem:[%s624_s3 + $0x10] sm:$0xff]  ;;  %v144_v11 = vld [vmem:[%s624_s3 + $0x18] sm:$0xff] }
   0x4   :  { %392 = vmatprep.subr.bf16.mxu0 %v391_v3  ;;  %v399_v10 = vpack.c.bf16 %v142_v8, %v141_v7  ;;  %v403_v12 = vpack.c.bf16 %v144_v11, %v143_v9  ;;  %v145_v13 = vld [vmem:[%s624_s3 + $0x20] sm:$0xff]  ;;  %v146_v14 = vld [vmem:[%s624_s3 + $0x28] sm:$0xff] }
   0x5   :  { %394 = vmatpush3.bf16.msra.mxu0 %v391_v3 }
   0x6   :  { %12 = vsyncpa [#allocation4], 0  ;;  %396 = vmatprep.subr.bf16.mxu0 %v395_v6  ;;  %400 = vmatprep.subr.bf16.mxu1 %v399_v10  ;;  %v407_v15 = vpack.c.bf16 %v146_v14, %v145_v13  ;;  %v551_v16 = vld [vmem:[%s621_s0 + $0x8] sm:$0xff]  ;;  %v147_v17 = vld [vmem:[%s624_s3 + $0x30] sm:$0xff]  ;;  %v467_v32 = vmov 0.0   ;;  %s468_s24 = smov [#allocation3]  }
   0x7   :  { %402 = vmatpush3.bf16.msra.mxu1 %v399_v10  ;;  %v148_v18 = vld [vmem:[%s624_s3 + $0x38] sm:$0xff]  ;;  %v149_v20 = vld [vmem:[%s624_s3 + $0x40] sm:$0xff]  ;;  %v150_v21 = vld [vmem:[%s624_s3 + $0x48] sm:$0xff]  ;;  %33 = vst.msk [vmem:[#allocation2 + $0x8] sm:$0xff] %vm31_vm0, %v467_v32  ;;  %s304_s25 = sshll.u32 %s468_s24, 4  ;;  %s305_s25 = int_to_ptr.vmem [resolvable:$true] %s304_s25 }
   0x8   :  { %404 = vmatprep.subr.bf16.mxu1 %v403_v12  ;;  %v411_v19 = vpack.c.bf16 %v148_v18, %v147_v17  ;;  %v415_v22 = vpack.c.bf16 %v150_v21, %v149_v20  ;;  %v151_v23 = vld [vmem:[%s624_s3 + $0x50] sm:$0xff]  ;;  %v152_v24 = vld [vmem:[%s624_s3 + $0x58] sm:$0xff]  ;;  %v153_v26 = vld [vmem:[%s624_s3 + $0x60] sm:$0xff]  ;;  %32 = vst.msk [vmem:[#allocation2] sm:$0xff] %vm31_vm0, %v467_v32  ;;  %s443_s26 = scalar_lea.vmem %s305_s25, 256  ;;  %p448_p1 = scmp.lt.s32.totalorder %s305_s25, %s305_s25 }
   0x9   :  { %398 = vmatpush3.bf16.msra.mxu0 %v395_v6  ;;  %v419_v25 = vpack.c.bf16 %v152_v24, %v151_v23  ;;  %v154_v27 = vld [vmem:[%s624_s3 + $0x68] sm:$0xff]  ;;  %v155_v29 = vld [vmem:[%s624_s3 + $0x70] sm:$0xff]  ;;  %v156_v30 = vld [vmem:[%s624_s3 + $0x78] sm:$0xff]  ;;  %p444_p0 = scmp.ne.s32.totalorder %s305_s25, %s443_s26  ;;  %p449_p2 = scmp.lt.s32.totalorder %s443_s26, %s443_s26 }
   0xa   :  { %v423_v28 = vpack.c.bf16 %v154_v27, %v153_v26  ;;  %v427_v31 = vpack.c.bf16 %v156_v30, %v155_v29  ;;  %v315_v33 = vld [vmem:[%s623_s2] ss:$0 sm:$0xff] }
   0xb   :  { %406 = vmatpush3.bf16.msra.mxu1 %v403_v12  ;;  %v318_v54 = vld [vmem:[%s625_s4] ss:$0 sm:$0xff]  ;;  %p450_p3 = por %p449_p2, %p448_p1 }
   0xc   :  { %354 = vmatmul.mubr.msk.f32.vlgmr.msra.gmra.mrb[0].mxu0 %vm31_vm0, %v551_v16  ;;  %408 = vmatprep.subr.bf16.mxu1 %v407_v15  ;;  %v320_v18 = vld [vmem:[%s627_s6] ss:$0 sm:$0xff] }
   0xd   :  { %p451_p4 = pnand %p450_p3, %p444_p0 }
   0xe   :  { %v140_v48 = vld [vmem:[#allocation2 + $0x8] sm:$0xff] }
   0xf   :  { %410 = vmatpush3.bf16.msra.mxu1 %v407_v15  ;;  %v139_v49 = vld [vmem:[#allocation2] sm:$0xff] }
  0x10   :  { %412 = vmatprep.subr.bf16.mxu1 %v411_v19 }
  0x13   :  { %414 = vmatpush3.bf16.msra.mxu1 %v411_v19 }
  0x14   :  { %416 = vmatprep.subr.bf16.mxu1 %v415_v22 }
  0x17   :  { %418 = vmatpush3.bf16.msra.mxu1 %v415_v22 }
  0x18   :  { %420 = vmatprep.subr.bf16.mxu1 %v419_v25 }
  0x1b   :  { %422 = vmatpush3.bf16.msra.mxu1 %v419_v25 }
  0x1c   :  { %424 = vmatprep.subr.bf16.mxu1 %v423_v28 }
  0x1f   :  { %426 = vmatpush3.bf16.msra.mxu1 %v423_v28 }
  0x20   :  { %428 = vmatprep.subr.bf16.mxu1 %v427_v31 }
  0x23   :  { %430 = vmatpush3.bf16.msra.mxu1 %v427_v31 }
  0xdf   :  { %v355_v34 = vpop.f32.mrb[0].mxu0 }
  0xe0   :  { %v126_v35 = vadd.f32 %v355_v34, %v315_v33  ;;  %v120_v36 = vpop.f32.mrb[1].mxu0 }
  0xe1   :  { %v121_v37 = vadd.f32 %v315_v33, %v120_v36 }
  0xe2   :  { %v132_v38 = vmul.f32 0.70710677, %v126_v35  ;;  %v130_v45 = vmul.f32 0.5, %v126_v35 }
  0xe3   :  { %v131_v39 = vmul.f32 0.70710677, %v121_v37  ;;  %v129_v43 = vmul.f32 0.5, %v121_v37 }
  0xe4   :  { %435 = verf.f32 %v132_v38 }
  0xe5   :  { %437 = verf.f32 %v131_v39 }
  0xee   :  { %v436_v40 = vpop.eup %435 }
  0xef   :  { %v438_v41 = vpop.eup %437  ;;  %v136_v42 = vadd.f32 1.0, %v436_v40 }
  0xf0   :  { %v135_v44 = vadd.f32 1.0, %v438_v41 }
  0xf1   :  { %v138_v47 = vmul.f32 %v136_v42, %v130_v45 }
  0xf2   :  { %v137_v46 = vmul.f32 %v135_v44, %v129_v43 }
  0xf4   :  { %388 = vmatprep.mubr.f32.mxu1 %v137_v46 }
  0xf5   :  { %389 = vmatmul.mubr.f32.vlgmr.msra.gmra.mrb[0].mxu1 %v138_v47 }
 0x1c8   :  { %v390_v50 = vpop.f32.mrb[0].mxu1 }
 0x1c9   :  { %v233_v51 = vadd.f32 %v390_v50, %v140_v48  ;;  %v223_v52 = vpop.f32.mrb[1].mxu1 }
 0x1ca   :  { %v232_v53 = vadd.f32 %v223_v52, %v139_v49 }
 0x1cb   :  { %235 = vst.msk [vmem:[#allocation2 + $0x8] sm:$0xff] %vm31_vm0, %v233_v51 }
 0x1cc   :  { %234 = vst.msk [vmem:[#allocation2] sm:$0xff] %vm31_vm0, %v232_v53 }
 0x1d2   :  { %v240_v55 = vld [vmem:[#allocation2 + $0x8] sm:$0xff] }
 0x1d3   :  { %v239_v56 = vld [vmem:[#allocation2] sm:$0xff]  ;;  %v249_v58 = vadd.f32 %v318_v54, %v240_v55 }
 0x1d4   :  { %v248_v57 = vadd.f32 %v318_v54, %v239_v56 }
 0x1d5   :  { %v251_v61 = vadd.f32 %v249_v58, %v551_v16  ;;  %v319_v16 = vld [vmem:[%s626_s5] ss:$0 sm:$0xff] }
 0x1d6   :  { %v250_v59 = vadd.f32 %v248_v57, %v526_v5 }
 0x1d7   :  { %v255_v62 = vsel %vm31_vm0, %v251_v61, 0.0 }
 0x1d8   :  { %v252_v60 = vsel %vm31_vm0, %v250_v59, 0.0 }
 0x1d9   :  { %253 = vadd.xlane.f32.xlu0 %v252_v60 }
 0x1dd   :  { %256 = vadd.xlane.f32.xlu0 %v255_v62 }
 0x266   :  { %v254_v63 = vpop.xlane.xlu0 %253 }
 0x267   :  { %v259_v0 = vmul.f32 0.03125, %v254_v63 }
 0x269   :  { %v261_v1 = vsub.f32 %v250_v59, %v259_v0 }
 0x26a   :  { %v257_v2 = vpop.xlane.xlu0 %256 }
 0x26b   :  { %v260_v3 = vmul.f32 0.03125, %v257_v2  ;;  %v263_v4 = vmul.f32 %v261_v1, %v261_v1 }
 0x26d   :  { %v262_v6 = vsub.f32 %v251_v61, %v260_v3  ;;  %v265_v7 = vsel %vm31_vm0, %v263_v4, 0.0 }
 0x26e   :  { %266 = vadd.xlane.f32.xlu1 %v265_v7 }
 0x26f   :  { %v264_v8 = vmul.f32 %v262_v6, %v262_v6 }
 0x271   :  { %v268_v5 = vsel %vm31_vm0, %v264_v8, 0.0 }
 0x272   :  { %269 = vadd.xlane.f32.xlu1 %v268_v5 }
 0x2fb   :  { %v267_v9 = vpop.xlane.xlu1 %266 }
 0x2fc   :  { %v271_v10 = vmul.f32 0.03125, %v267_v9 }
 0x2fe   :  { %v273_v11 = vadd.f32 1e-05, %v271_v10 }
 0x2ff   :  { %v270_v12 = vpop.xlane.xlu1 %269 }
 0x300   :  { %439 = vrsqrt.f32 %v273_v11  ;;  %v272_v13 = vmul.f32 0.03125, %v270_v12 }
 0x302   :  { %v274_v14 = vadd.f32 1e-05, %v272_v13 }
 0x304   :  { %441 = vrsqrt.f32 %v274_v14 }
 0x30a   :  { %v440_v15 = vpop.eup %439 }
 0x30b   :  { %v277_v17 = vmul.f32 %v440_v15, %v261_v1 }
 0x30d   :  { %v286_v19 = vmul.f32 %v319_v16, %v277_v17 }
 0x30e   :  { %v442_v20 = vpop.eup %441 }
 0x30f   :  { %v278_v21 = vmul.f32 %v442_v20, %v262_v6  ;;  %v295_v22 = vadd.f32 %v320_v18, %v286_v19 }
 0x311   :  { %v287_v23 = vmul.f32 %v319_v16, %v278_v21  ;;  %297 = vst.msk [vmem:[#allocation3] sm:$0xff] %vm31_vm0, %v295_v22 }
 0x313   :  { %v296_v24 = vadd.f32 %v320_v18, %v287_v23 }
 0x315   :  { %298 = vst.msk [vmem:[#allocation3 + $0x8] sm:$0xff] %vm31_vm0, %v296_v24 }
 0x316   :  { %454 = shalt.err (!%p451_p4)
}
 0x317   :  { %s455_s27 = scalar_lea.hbm %s628_s7, 256 }
 0x318   :  { %p456_p5 = scmp.ne.s32.totalorder %s628_s7, %s455_s27  ;;  %p459_p6 = scmp.lt.u32.totalorder %s455_s27, %s628_s7 }
 0x31a   :  { %p461_p7 = pnand %p459_p6, %p456_p5 }
 0x31c   :  { %464 = shalt.err (!%p461_p7)
}
 0x31d   :  { %s469_s8 = smov 128   ;;  %s470_s9 = smov 8  }
 0x31e   :  { %310 = dma.vmem_to_hbm [thread:$0]  %s305_s25, 256, %s628_s7, [#allocation4], %s469_s8, %s469_s8, %s470_s9  }
 0x31f   :  { %465 = dma.done.wait [#allocation4], 256  }
 0x320   :  { %466 = vsyncadd [#allocation4], 4294967040 }
 0x321   :  { %314 = vsyncpa [#allocation4], 1 }

</bundles_post_ra>
